<compile_context>
chip_gen: v5e
topology: v5e:2x2
jax: 0.10.0
libtpu: 0.0.40
codegen_flags: <defaults>
</compile_context>

<pallas_src>
import functools

import numpy as np
import jax
import jax.numpy as jnp
from jax import lax
from jax.experimental import pallas as pl
from jax.experimental.pallas import tpu as pltpu


# ----------------------------------------------------------------------------- helpers

def _make_grid(grid_size, grid_spacing):
    """Replicates ReprojectionLayer.__init__ grid construction. Returns (g, g, g, 3) f32."""
    g = grid_size // 2
    half = g // 2
    idx = np.arange(g, dtype=np.float32) - half
    gi, gj, gk = np.meshgrid(idx, idx, idx, indexing="ij")
    grid = np.stack([gi, gj, gk], axis=-1) * (grid_spacing * 2.0)
    return grid.astype(np.float32)


def _linear_upsample_matrix(in_size, out_size):
    """1D linear-interpolation matrix W (out_size, in_size) matching
    torch.nn.functional.interpolate(mode='linear', align_corners=False)."""
    W = np.zeros((out_size, in_size), np.float32)
    scale = in_size / out_size
    for o in range(out_size):
        real = (o + 0.5) * scale - 0.5
        real = max(real, 0.0)
        i0 = min(int(real), in_size - 1)
        i1 = min(i0 + 1, in_size - 1)
        lam = real - i0
        W[o, i0] += 1.0 - lam
        W[o, i1] += lam
    return W


def _pick_tile(G3, max_tile=1024):
    """Largest multiple of 128 that divides G^3 (<= max_tile); fall back to the full extent."""
    cand = min(max_tile, (G3 // 128) * 128)
    while cand >= 128:
        if G3 % cand == 0:
            return cand
        cand -= 128
    return G3


# ----------------------------------------------------------------------------- kernel

def _repro_kernel(grid_ref, center_ref, pmat_ref, kp_ref, hm_ref, wk_ref,
                  out_ref, idx_sc, *, heatmap_size, num_cameras):
    """One (G^3-tile, camera) grid step.

    grid_ref   : (4, g^3)     f32  homogeneous world grid, transposed (row 3 = ones), VMEM
    center_ref : (4, 1)       f32  [cx, cy, cz, 0]^T
    pmat_ref   : (3, C, 4)    f32  pmat_ref[comp, c] = column `comp` of camera c's 4x3 matrix
    kp_ref     : (C, 8)       f32  [fx, fy, cx, cy, k1, k2, centerHM_x, centerHM_y]
    hm_ref     : (1, J, hs^2) bf16 heatmap block of the current camera
    wk_ref     : (g^3, TILE)  f32  transposed trilinear-upsample (kron) matrix, current tile
    out_ref    : (J, TILE)    f32  output block (resident across the camera axis)
    idx_sc     : (C, TILE)    i32  scratch: gathered heatmap indices for every camera
    """
    hs = heatmap_size
    C = num_cameras
    hs2 = hs * hs
    c = pl.program_id(1)
    tile = out_ref.shape[1]

    # ---- coordinate pipeline: once per output tile, vectorized over all cameras --------------
    @pl.when(c == 0)
    def _compute_indices():
        x = grid_ref[...] + center_ref[...]                                    # (4, g3)
        px = jnp.dot(pmat_ref[0], x, preferred_element_type=jnp.float32)       # (C, g3)
        py = jnp.dot(pmat_ref[1], x, preferred_element_type=jnp.float32)
        pz = jnp.dot(pmat_ref[2], x, preferred_element_type=jnp.float32)

        fx = kp_ref[:, 0:1]
        fy = kp_ref[:, 1:2]
        cx = kp_ref[:, 2:3]
        cy = kp_ref[:, 3:4]
        k1 = kp_ref[:, 4:5]
        k2 = kp_ref[:, 5:6]
        chx = kp_ref[:, 6:7]
        chy = kp_ref[:, 7:8]

        inv_z = 1.0 / pz                        # single divide per point, reused for v1 & v2
        v1 = px * inv_z - cx
        v2 = py * inv_z - cy
        r2 = jnp.square(v1 * (1.0 / fx)) + jnp.square(v2 * (1.0 / fy))
        distort = 1.0 + (k1 + k2 * r2) * r2
        v1 = v1 * distort + cx
        v2 = v2 * distort + cy
        v1 = jnp.clip(v1, chx - (hs - 1), chx + hs - 2) - chx + (hs - 1)
        v2 = jnp.clip(v2, chy - (hs - 1), chy + hs - 2) - chy + (hs - 1)

        # trilinear upsample of coordinates: one matmul per coordinate for ALL cameras
        wk = wk_ref[...]                                                       # (g3, tile)
        vf1 = jnp.dot(v1, wk, preferred_element_type=jnp.float32)              # (C, tile)
        vf2 = jnp.dot(v2, wk, preferred_element_type=jnp.float32)              # (C, tile)
        ix = (vf1 * 0.5).astype(jnp.int32)      # truncation toward zero == torch .int()
        iy = (vf2 * 0.5).astype(jnp.int32)
        idx_sc[...] = iy * hs + ix                                             # (C, tile)

    # ---- gather for camera `c` as a bf16 MXU matmul with lane-dense output --------------------
    idx_row = idx_sc[pl.ds(c, 1), :]                                           # (1, tile)
    row_iota = lax.broadcasted_iota(jnp.int32, (hs2, tile), 0)
    onehot = (row_iota == idx_row).astype(jnp.bfloat16)                        # (hs2, tile)
    contrib = jnp.dot(hm_ref[0], onehot, preferred_element_type=jnp.float32)   # (J, tile)

    @pl.when(c == 0)
    def _init():
        out_ref[...] = contrib

    @pl.when(c > 0)
    def _accumulate():
        out_ref[...] = out_ref[...] + contrib

    @pl.when(c == C - 1)
    def _finalize():
        out_ref[...] = out_ref[...] * (1.0 / C)


# ----------------------------------------------------------------------------- wrapper

def reprojection_layer_forward(heatmaps, center, centerHM, cameraMatrices,
                               intrinsicMatrices, distortionCoefficients,
                               *, grid_spacing, roi_cube_size, bbox_size, tile_g3=256):
    G = roi_cube_size // grid_spacing            # full grid size
    g = G // 2                                   # half-resolution grid size
    hs = bbox_size // 2 + 2                      # heatmap_size
    hs2 = hs * hs
    C = cameraMatrices.shape[1]
    J = heatmaps.shape[2]
    G3 = G ** 3
    g3 = g ** 3

    tg = _pick_tile(G3, max_tile=tile_g3)
    num_tiles = G3 // tg

    # ---- static / glue tensors, all in transposed lane-dense layouts ----
    grid_flat = _make_grid(G, grid_spacing).reshape(-1, 3)                     # (g3, 3) numpy
    gridT = jnp.asarray(
        np.concatenate([grid_flat.T, np.ones((1, g3), np.float32)], axis=0))   # (4, g3)
    center4 = jnp.concatenate([center[0].astype(jnp.float32),
                               jnp.zeros((1,), jnp.float32)])[:, None]         # (4, 1)

    P = cameraMatrices[0].astype(jnp.float32)                                  # (C, 4, 3)
    pmat = jnp.transpose(P, (2, 0, 1))                                         # (3, C, 4)

    K = intrinsicMatrices[0].astype(jnp.float32)
    D = distortionCoefficients[0].astype(jnp.float32)
    cHM = centerHM[0].astype(jnp.float32)
    kp = jnp.stack([K[:, 0, 0], K[:, 1, 1], K[:, 2, 0], K[:, 2, 1],
                    D[:, 0, 0], D[:, 0, 1], cHM[:, 0], cHM[:, 1]], axis=1)     # (C, 8)

    # Heatmaps stay in their native (C, J, hs^2) layout (hs^2 lane-dense); bf16 for the MXU.
    hm = heatmaps[0].reshape(C, J, hs2).astype(jnp.bfloat16)

    # TODO(synk): at production grid sizes replace the dense (G^3, g^3) Kronecker matrix with
    # separable per-axis W1 (G, g) interpolation; kept dense here since it is exact and tiny at
    # these shapes.
    W1 = _linear_upsample_matrix(g, G)
    WkT = jnp.asarray(np.ascontiguousarray(np.kron(np.kron(W1, W1), W1).T))    # (g3, G3)

    kernel = functools.partial(_repro_kernel, heatmap_size=hs, num_cameras=C)
    out = pl.pallas_call(
        kernel,
        out_shape=jax.ShapeDtypeStruct((J, G3), jnp.float32),
        grid_spec=pltpu.PrefetchScalarGridSpec(
            num_scalar_prefetch=0,
            grid=(num_tiles, C),                                    # cameras = reduction (last)
            in_specs=[
                pl.BlockSpec((4, g3), lambda t, c: (0, 0)),         # gridT    (resident)
                pl.BlockSpec((4, 1), lambda t, c: (0, 0)),          # center4  (resident)
                pl.BlockSpec((3, C, 4), lambda t, c: (0, 0, 0)),    # pmat     (resident)
                pl.BlockSpec((C, 8), lambda t, c: (0, 0)),          # kp       (resident)
                pl.BlockSpec((1, J, hs2), lambda t, c: (c, 0, 0)),  # heatmap of camera c
                pl.BlockSpec((g3, tg), lambda t, c: (0, t)),        # WkT tile
            ],
            out_specs=pl.BlockSpec((J, tg), lambda t, c: (0, t)),
            scratch_shapes=[pltpu.VMEM((C, tg), jnp.int32)],
        ),
        compiler_params=pltpu.CompilerParams(
            dimension_semantics=("parallel", "arbitrary"),
            vmem_limit_bytes=48 * 1024 * 1024,
        ),
    )(gridT, center4, pmat, kp, hm, WkT)

    # (J, G^3) is already the PyTorch output ordering — reshape only, no transpose.
    return out.reshape(J, G, G, G)[None]


# ----------------------------------------------------------------------------- reference

def _reference_forward(heatmaps, center, centerHM, cam, K, dist,
                       *, grid_spacing, roi_cube_size, bbox_size):
    """Numpy reference mirroring the PyTorch module semantics."""
    G = roi_cube_size // grid_spacing
    g = G // 2
    hs = bbox_size // 2 + 2
    heat0 = np.asarray(heatmaps[0], np.float32)            # (C, J, hs, hs)
    hmT = np.transpose(heat0, (1, 0, 2, 3))                # (J, C, hs, hs)
    C, J = heat0.shape[0], heat0.shape[1]

    grid_base = _make_grid(G, grid_spacing)                # (g,g,g,3)
    x = grid_base + np.asarray(center[0], np.float32)
    ones = np.ones(x.shape[:3] + (1,), np.float32)
    xh = np.concatenate([x, ones], axis=3).reshape(1, -1, 4)

    P = np.asarray(cam[0], np.float32)                     # (C,4,3)
    partial = np.matmul(xh, P).reshape(C, g, g, g, 3).transpose(1, 2, 3, 4, 0)

    Ka = np.asarray(K[0], np.float32)
    Da = np.asarray(dist[0], np.float32)
    cHM = np.asarray(centerHM[0], np.float32)
    fx, fy = Ka[:, 0, 0], Ka[:, 1, 1]
    cx, cy = Ka[:, 2, 0], Ka[:, 2, 1]
    k1, k2 = Da[:, 0, 0], Da[:, 0, 1]
    chx, chy = cHM[:, 0], cHM[:, 1]

    v1 = partial[:, :, :, 0] / partial[:, :, :, 2] - cx
    v2 = partial[:, :, :, 1] / partial[:, :, :, 2] - cy
    r2 = (v1 / fx) ** 2 + (v2 / fy) ** 2
    distort = 1 + (k1 + k2 * r2) * r2
    v1 = v1 * distort + cx
    v2 = v2 * distort + cy
    v1 = np.clip(v1, chx - (hs - 1), chx + hs - 2) - chx + hs - 1
    v2 = np.clip(v2, chy - (hs - 1), chy + hs - 2) - chy + hs - 1

    W1 = _linear_upsample_matrix(g, G)
    Wk = np.kron(np.kron(W1, W1), W1)
    v1f = (Wk @ v1.reshape(-1, C)).reshape(G, G, G, C)
    v2f = (Wk @ v2.reshape(-1, C)).reshape(G, G, G, C)
    ix = (v1f / 2).astype(np.int32)
    iy = (v2f / 2).astype(np.int32)
    idx = iy * hs + ix                                     # (G,G,G,C)

    hm_flat = hmT.reshape(J, C, hs * hs)
    out = np.zeros((J, G, G, G), np.float32)
    for c in range(C):
        out += hm_flat[:, c, :][:, idx[..., c]]
    out /= C
    return out[None]


# ----------------------------------------------------------------------------- main

if __name__ == "__main__":
    # Small synthetic config
    GRID_SPACING = 2
    ROI_CUBE_SIZE = 16        # -> grid_size G = 8, half grid g = 4, G^3 = 512
    BBOX = 12                 # -> heatmap_size hs = 8
    C, J = 4, 4
    hs = BBOX // 2 + 2

    key = jax.random.PRNGKey(0)
    k1_, k2_, k3_, k4_, k5_ = jax.random.split(key, 5)

    heatmaps = jax.random.uniform(k1_, (1, C, J, hs, hs), jnp.float32)
    center = jax.random.uniform(k2_, (1, 3), jnp.float32) * 10.0
    centerHM = 400.0 + jax.random.uniform(k3_, (1, C, 2), jnp.float32) * 20.0

    # Camera projection matrices (stored transposed, x @ P), with positive depth column.
    rot = jax.random.normal(k4_, (C, 3, 2), jnp.float32) * 30.0
    zcol = jax.random.normal(k5_, (C, 3, 1), jnp.float32) * 0.01
    trans = jnp.stack([40200.0 + 100.0 * jnp.arange(C, dtype=jnp.float32),
                       40800.0 + 100.0 * jnp.arange(C, dtype=jnp.float32),
                       100.0 + jnp.zeros(C, jnp.float32)], axis=1)          # (C, 3)
    cameraMatrices = jnp.concatenate(
        [jnp.concatenate([rot, zcol], axis=2), trans[:, None, :]], axis=1)[None]  # (1,C,4,3)

    intrinsicMatrices = jnp.zeros((1, C, 3, 3), jnp.float32)
    for c in range(C):
        intrinsicMatrices = intrinsicMatrices.at[0, c, 0, 0].set(300.0 + 10.0 * c)
        intrinsicMatrices = intrinsicMatrices.at[0, c, 1, 1].set(310.0 + 10.0 * c)
        intrinsicMatrices = intrinsicMatrices.at[0, c, 2, 0].set(400.0)
        intrinsicMatrices = intrinsicMatrices.at[0, c, 2, 1].set(410.0)
        intrinsicMatrices = intrinsicMatrices.at[0, c, 2, 2].set(1.0)

    distortionCoefficients = jnp.zeros((1, C, 1, 5), jnp.float32)
    distortionCoefficients = distortionCoefficients.at[0, :, 0, 0].set(-0.05)
    distortionCoefficients = distortionCoefficients.at[0, :, 0, 1].set(0.005)

    out = reprojection_layer_forward(
        heatmaps, center, centerHM, cameraMatrices, intrinsicMatrices,
        distortionCoefficients,
        grid_spacing=GRID_SPACING, roi_cube_size=ROI_CUBE_SIZE, bbox_size=BBOX)
    out = jax.block_until_ready(out)

    G = ROI_CUBE_SIZE // GRID_SPACING
    assert out.shape == (1, J, G, G, G), out.shape

    # Sanity check vs numpy reference.  The gather matmul runs in bf16, so compare against the
    # reference evaluated on bf16-rounded heatmaps; remaining differences are rare integer
    # truncation flips at exact boundaries under differing f32 accumulation orders.
    hm_bf16 = np.asarray(jnp.asarray(heatmaps, jnp.bfloat16).astype(jnp.float32))
    ref = _reference_forward(hm_bf16, center, centerHM, cameraMatrices,
                             intrinsicMatrices, distortionCoefficients,
                             grid_spacing=GRID_SPACING, roi_cube_size=ROI_CUBE_SIZE,
                             bbox_size=BBOX)
    diff = np.abs(np.asarray(out, np.float32) - ref)
    mismatch_frac = float(np.mean(diff > 1e-3))
    assert mismatch_frac < 0.02, f"mismatch fraction too high: {mismatch_frac}"

    print("KERNEL_OK")
</pallas_src>

<mosaic_0001>
module attributes {stable_mosaic.version = 11 : i64} {
  func.func @_repro_kernel(%arg0: i32, %arg1: i32, %arg2: memref<4x64xf32, #tpu.memory_space<vmem>>, %arg3: memref<4x1xf32, #tpu.memory_space<vmem>>, %arg4: memref<3x4x4xf32, #tpu.memory_space<vmem>>, %arg5: memref<4x8xf32, #tpu.memory_space<vmem>>, %arg6: memref<1x4x64xbf16, #tpu.memory_space<vmem>>, %arg7: memref<64x256xf32, #tpu.memory_space<vmem>>, %arg8: memref<4x256xf32, #tpu.memory_space<vmem>>, %arg9: memref<4x256xi32, #tpu.memory_space<vmem>>) attributes {dimension_semantics = [#tpu.dimension_semantics<parallel>, #tpu.dimension_semantics<arbitrary>], iteration_bounds = array<i64: 2, 4>, scalar_prefetch = 0 : i64, scratch_operands = 1 : i64, tpu.core_type = #tpu.core_type<tc>, window_params = [{pipeline_mode = #tpu.pipeline_mode<synchronous>, transform_indices = @transform_0, window_bounds = array<i64: 4, 64>}, {pipeline_mode = #tpu.pipeline_mode<synchronous>, transform_indices = @transform_1, window_bounds = array<i64: 4, 1>}, {pipeline_mode = #tpu.pipeline_mode<synchronous>, transform_indices = @transform_2, window_bounds = array<i64: 3, 4, 4>}, {pipeline_mode = #tpu.pipeline_mode<synchronous>, transform_indices = @transform_3, window_bounds = array<i64: 4, 8>}, {transform_indices = @transform_4, window_bounds = array<i64: 1, 4, 64>}, {transform_indices = @transform_5, window_bounds = array<i64: 64, 256>}, {transform_indices = @transform_6, window_bounds = array<i64: 4, 256>}]} {
    %c0_i32 = arith.constant 0 : i32
    %0 = arith.cmpi eq, %arg1, %c0_i32 : i32
    %1 = arith.extui %0 : i1 to i32
    %c0_i32_0 = arith.constant 0 : i32
    %2 = arith.cmpi ne, %1, %c0_i32_0 : i32
    scf.if %2 {
      %c0_9 = arith.constant 0 : index
      %c0_10 = arith.constant 0 : index
      %23 = vector.load %arg2[%c0_9, %c0_10] : memref<4x64xf32, #tpu.memory_space<vmem>>, vector<4x64xf32>
      %c0_11 = arith.constant 0 : index
      %c0_12 = arith.constant 0 : index
      %24 = vector.load %arg3[%c0_11, %c0_12] : memref<4x1xf32, #tpu.memory_space<vmem>>, vector<4x1xf32>
      %25 = vector.broadcast %24 : vector<4x1xf32> to vector<4x64xf32>
      %26 = arith.addf %23, %25 : vector<4x64xf32>
      %c0_13 = arith.constant 0 : index
      %c0_14 = arith.constant 0 : index
      %c0_15 = arith.constant 0 : index
      %27 = vector.load %arg4[%c0_13, %c0_14, %c0_15] : memref<3x4x4xf32, #tpu.memory_space<vmem>>, vector<1x4x4xf32>
      %28 = vector.shape_cast %27 : vector<1x4x4xf32> to vector<4x4xf32>
      %cst_16 = arith.constant dense<0.000000e+00> : vector<4x64xf32>
      %29 = tpu.matmul %28, %26, %cst_16 {dimension_numbers = #tpu.dot_dimension_numbers<[1], [0], [0], [1], [0, 0, 1, 1], [], []>} : vector<4x4xf32>, vector<4x64xf32>, vector<4x64xf32> -> vector<4x64xf32>
      %c1 = arith.constant 1 : index
      %c0_17 = arith.constant 0 : index
      %c0_18 = arith.constant 0 : index
      %30 = vector.load %arg4[%c1, %c0_17, %c0_18] : memref<3x4x4xf32, #tpu.memory_space<vmem>>, vector<1x4x4xf32>
      %31 = vector.shape_cast %30 : vector<1x4x4xf32> to vector<4x4xf32>
      %cst_19 = arith.constant dense<0.000000e+00> : vector<4x64xf32>
      %32 = tpu.matmul %31, %26, %cst_19 {dimension_numbers = #tpu.dot_dimension_numbers<[1], [0], [0], [1], [0, 0, 1, 1], [], []>} : vector<4x4xf32>, vector<4x64xf32>, vector<4x64xf32> -> vector<4x64xf32>
      %c2 = arith.constant 2 : index
      %c0_20 = arith.constant 0 : index
      %c0_21 = arith.constant 0 : index
      %33 = vector.load %arg4[%c2, %c0_20, %c0_21] : memref<3x4x4xf32, #tpu.memory_space<vmem>>, vector<1x4x4xf32>
      %34 = vector.shape_cast %33 : vector<1x4x4xf32> to vector<4x4xf32>
      %cst_22 = arith.constant dense<0.000000e+00> : vector<4x64xf32>
      %35 = tpu.matmul %34, %26, %cst_22 {dimension_numbers = #tpu.dot_dimension_numbers<[1], [0], [0], [1], [0, 0, 1, 1], [], []>} : vector<4x4xf32>, vector<4x64xf32>, vector<4x64xf32> -> vector<4x64xf32>
      %c0_23 = arith.constant 0 : index
      %c0_24 = arith.constant 0 : index
      %36 = vector.load %arg5[%c0_23, %c0_24] : memref<4x8xf32, #tpu.memory_space<vmem>>, vector<4x1xf32>
      %c0_25 = arith.constant 0 : index
      %c1_26 = arith.constant 1 : index
      %37 = vector.load %arg5[%c0_25, %c1_26] : memref<4x8xf32, #tpu.memory_space<vmem>>, vector<4x1xf32>
      %c0_27 = arith.constant 0 : index
      %c2_28 = arith.constant 2 : index
      %38 = vector.load %arg5[%c0_27, %c2_28] : memref<4x8xf32, #tpu.memory_space<vmem>>, vector<4x1xf32>
      %c0_29 = arith.constant 0 : index
      %c3 = arith.constant 3 : index
      %39 = vector.load %arg5[%c0_29, %c3] : memref<4x8xf32, #tpu.memory_space<vmem>>, vector<4x1xf32>
      %c0_30 = arith.constant 0 : index
      %c4 = arith.constant 4 : index
      %40 = vector.load %arg5[%c0_30, %c4] : memref<4x8xf32, #tpu.memory_space<vmem>>, vector<4x1xf32>
      %c0_31 = arith.constant 0 : index
      %c5 = arith.constant 5 : index
      %41 = vector.load %arg5[%c0_31, %c5] : memref<4x8xf32, #tpu.memory_space<vmem>>, vector<4x1xf32>
      %c0_32 = arith.constant 0 : index
      %c6 = arith.constant 6 : index
      %42 = vector.load %arg5[%c0_32, %c6] : memref<4x8xf32, #tpu.memory_space<vmem>>, vector<4x1xf32>
      %c0_33 = arith.constant 0 : index
      %c7 = arith.constant 7 : index
      %43 = vector.load %arg5[%c0_33, %c7] : memref<4x8xf32, #tpu.memory_space<vmem>>, vector<4x1xf32>
      %cst_34 = arith.constant 1.000000e+00 : f32
      %44 = vector.broadcast %cst_34 : f32 to vector<4x64xf32>
      %45 = arith.divf %44, %35 : vector<4x64xf32>
      %46 = arith.mulf %29, %45 : vector<4x64xf32>
      %47 = vector.broadcast %38 : vector<4x1xf32> to vector<4x64xf32>
      %48 = arith.subf %46, %47 : vector<4x64xf32>
      %49 = arith.mulf %32, %45 : vector<4x64xf32>
      %50 = vector.broadcast %39 : vector<4x1xf32> to vector<4x64xf32>
      %51 = arith.subf %49, %50 : vector<4x64xf32>
      %cst_35 = arith.constant 1.000000e+00 : f32
      %52 = vector.broadcast %cst_35 : f32 to vector<4x1xf32>
      %53 = arith.divf %52, %36 : vector<4x1xf32>
      %54 = vector.broadcast %53 : vector<4x1xf32> to vector<4x64xf32>
      %55 = arith.mulf %48, %54 : vector<4x64xf32>
      %56 = arith.mulf %55, %55 : vector<4x64xf32>
      %cst_36 = arith.constant 1.000000e+00 : f32
      %57 = vector.broadcast %cst_36 : f32 to vector<4x1xf32>
      %58 = arith.divf %57, %37 : vector<4x1xf32>
      %59 = vector.broadcast %58 : vector<4x1xf32> to vector<4x64xf32>
      %60 = arith.mulf %51, %59 : vector<4x64xf32>
      %61 = arith.mulf %60, %60 : vector<4x64xf32>
      %62 = arith.addf %56, %61 : vector<4x64xf32>
      %63 = vector.broadcast %41 : vector<4x1xf32> to vector<4x64xf32>
      %64 = arith.mulf %63, %62 : vector<4x64xf32>
      %65 = vector.broadcast %40 : vector<4x1xf32> to vector<4x64xf32>
      %66 = arith.addf %65, %64 : vector<4x64xf32>
      %67 = arith.mulf %66, %62 : vector<4x64xf32>
      %cst_37 = arith.constant 1.000000e+00 : f32
      %68 = vector.broadcast %cst_37 : f32 to vector<4x64xf32>
      %69 = arith.addf %68, %67 : vector<4x64xf32>
      %70 = arith.mulf %48, %69 : vector<4x64xf32>
      %71 = vector.broadcast %38 : vector<4x1xf32> to vector<4x64xf32>
      %72 = arith.addf %70, %71 : vector<4x64xf32>
      %73 = arith.mulf %51, %69 : vector<4x64xf32>
      %74 = vector.broadcast %39 : vector<4x1xf32> to vector<4x64xf32>
      %75 = arith.addf %73, %74 : vector<4x64xf32>
      %cst_38 = arith.constant 7.000000e+00 : f32
      %76 = vector.broadcast %cst_38 : f32 to vector<4x1xf32>
      %77 = arith.subf %42, %76 : vector<4x1xf32>
      %cst_39 = arith.constant 8.000000e+00 : f32
      %78 = vector.broadcast %cst_39 : f32 to vector<4x1xf32>
      %79 = arith.addf %42, %78 : vector<4x1xf32>
      %cst_40 = arith.constant 2.000000e+00 : f32
      %80 = vector.broadcast %cst_40 : f32 to vector<4x1xf32>
      %81 = arith.subf %79, %80 : vector<4x1xf32>
      %82 = vector.broadcast %77 : vector<4x1xf32> to vector<4x64xf32>
      %83 = arith.maximumf %82, %72 : vector<4x64xf32>
      %84 = vector.broadcast %81 : vector<4x1xf32> to vector<4x64xf32>
      %85 = arith.minimumf %84, %83 : vector<4x64xf32>
      %86 = vector.broadcast %42 : vector<4x1xf32> to vector<4x64xf32>
      %87 = arith.subf %85, %86 : vector<4x64xf32>
      %cst_41 = arith.constant 7.000000e+00 : f32
      %88 = vector.broadcast %cst_41 : f32 to vector<4x64xf32>
      %89 = arith.addf %87, %88 : vector<4x64xf32>
      %cst_42 = arith.constant 7.000000e+00 : f32
      %90 = vector.broadcast %cst_42 : f32 to vector<4x1xf32>
      %91 = arith.subf %43, %90 : vector<4x1xf32>
      %cst_43 = arith.constant 8.000000e+00 : f32
      %92 = vector.broadcast %cst_43 : f32 to vector<4x1xf32>
      %93 = arith.addf %43, %92 : vector<4x1xf32>
      %cst_44 = arith.constant 2.000000e+00 : f32
      %94 = vector.broadcast %cst_44 : f32 to vector<4x1xf32>
      %95 = arith.subf %93, %94 : vector<4x1xf32>
      %96 = vector.broadcast %91 : vector<4x1xf32> to vector<4x64xf32>
      %97 = arith.maximumf %96, %75 : vector<4x64xf32>
      %98 = vector.broadcast %95 : vector<4x1xf32> to vector<4x64xf32>
      %99 = arith.minimumf %98, %97 : vector<4x64xf32>
      %100 = vector.broadcast %43 : vector<4x1xf32> to vector<4x64xf32>
      %101 = arith.subf %99, %100 : vector<4x64xf32>
      %cst_45 = arith.constant 7.000000e+00 : f32
      %102 = vector.broadcast %cst_45 : f32 to vector<4x64xf32>
      %103 = arith.addf %101, %102 : vector<4x64xf32>
      %c0_46 = arith.constant 0 : index
      %c0_47 = arith.constant 0 : index
      %104 = vector.load %arg7[%c0_46, %c0_47] : memref<64x256xf32, #tpu.memory_space<vmem>>, vector<64x256xf32>
      %cst_48 = arith.constant dense<0.000000e+00> : vector<4x256xf32>
      %105 = tpu.matmul %89, %104, %cst_48 {dimension_numbers = #tpu.dot_dimension_numbers<[1], [0], [0], [1], [0, 0, 1, 1], [], []>} : vector<4x64xf32>, vector<64x256xf32>, vector<4x256xf32> -> vector<4x256xf32>
      %cst_49 = arith.constant dense<0.000000e+00> : vector<4x256xf32>
      %106 = tpu.matmul %103, %104, %cst_49 {dimension_numbers = #tpu.dot_dimension_numbers<[1], [0], [0], [1], [0, 0, 1, 1], [], []>} : vector<4x64xf32>, vector<64x256xf32>, vector<4x256xf32> -> vector<4x256xf32>
      %cst_50 = arith.constant 5.000000e-01 : f32
      %107 = vector.broadcast %cst_50 : f32 to vector<4x256xf32>
      %108 = arith.mulf %105, %107 : vector<4x256xf32>
      %109 = arith.fptosi %108 : vector<4x256xf32> to vector<4x256xi32>
      %cst_51 = arith.constant 5.000000e-01 : f32
      %110 = vector.broadcast %cst_51 : f32 to vector<4x256xf32>
      %111 = arith.mulf %106, %110 : vector<4x256xf32>
      %112 = arith.fptosi %111 : vector<4x256xf32> to vector<4x256xi32>
      %c8_i32 = arith.constant 8 : i32
      %113 = vector.broadcast %c8_i32 : i32 to vector<4x256xi32>
      %114 = arith.muli %112, %113 : vector<4x256xi32>
      %115 = arith.addi %114, %109 : vector<4x256xi32>
      %c0_52 = arith.constant 0 : index
      %c0_53 = arith.constant 0 : index
      %116 = vector.load %arg9[%c0_52, %c0_53] : memref<4x256xi32, #tpu.memory_space<vmem>>, vector<4x256xi32>
      tpu.vector_store %arg9[%c0_52, %c0_53], %115 {strides = array<i32>} : memref<4x256xi32, #tpu.memory_space<vmem>>, vector<4x256xi32>,
    } else {
    }
    %3 = arith.index_cast %arg1 : i32 to index
    %c0 = arith.constant 0 : index
    %4 = vector.load %arg9[%3, %c0] : memref<4x256xi32, #tpu.memory_space<vmem>>, vector<1x256xi32>
    %5 = tpu.iota {dimensions = array<i32: 0>} : vector<64x256xi32>
    %6 = vector.broadcast %4 : vector<1x256xi32> to vector<64x256xi32>
    %7 = arith.cmpi eq, %5, %6 : vector<64x256xi32>
    %8 = arith.extui %7 : vector<64x256xi1> to vector<64x256xi32>
    %9 = arith.sitofp %8 : vector<64x256xi32> to vector<64x256xf32>
    %10 = arith.truncf %9 : vector<64x256xf32> to vector<64x256xbf16>
    %c0_1 = arith.constant 0 : index
    %c0_2 = arith.constant 0 : index
    %c0_3 = arith.constant 0 : index
    %11 = vector.load %arg6[%c0_1, %c0_2, %c0_3] : memref<1x4x64xbf16, #tpu.memory_space<vmem>>, vector<1x4x64xbf16>
    %12 = vector.shape_cast %11 : vector<1x4x64xbf16> to vector<4x64xbf16>
    %cst = arith.constant dense<0.000000e+00> : vector<4x256xf32>
    %13 = tpu.matmul %12, %10, %cst {dimension_numbers = #tpu.dot_dimension_numbers<[1], [0], [0], [1], [0, 0, 1, 1], [], []>} : vector<4x64xbf16>, vector<64x256xbf16>, vector<4x256xf32> -> vector<4x256xf32>
    %c0_i32_4 = arith.constant 0 : i32
    %14 = arith.cmpi eq, %arg1, %c0_i32_4 : i32
    %15 = arith.extui %14 : i1 to i32
    %c0_i32_5 = arith.constant 0 : i32
    %16 = arith.cmpi ne, %15, %c0_i32_5 : i32
    scf.if %16 {
      %c0_9 = arith.constant 0 : index
      %c0_10 = arith.constant 0 : index
      %23 = vector.load %arg8[%c0_9, %c0_10] : memref<4x256xf32, #tpu.memory_space<vmem>>, vector<4x256xf32>
      tpu.vector_store %arg8[%c0_9, %c0_10], %13 {strides = array<i32>} : memref<4x256xf32, #tpu.memory_space<vmem>>, vector<4x256xf32>,
    } else {
    }
    %c0_i32_6 = arith.constant 0 : i32
    %17 = arith.cmpi sgt, %arg1, %c0_i32_6 : i32
    %18 = arith.extui %17 : i1 to i32
    %c0_i32_7 = arith.constant 0 : i32
    %19 = arith.cmpi ne, %18, %c0_i32_7 : i32
    scf.if %19 {
      %c0_9 = arith.constant 0 : index
      %c0_10 = arith.constant 0 : index
      %23 = vector.load %arg8[%c0_9, %c0_10] : memref<4x256xf32, #tpu.memory_space<vmem>>, vector<4x256xf32>
      %24 = arith.addf %23, %13 : vector<4x256xf32>
      %c0_11 = arith.constant 0 : index
      %c0_12 = arith.constant 0 : index
      %25 = vector.load %arg8[%c0_11, %c0_12] : memref<4x256xf32, #tpu.memory_space<vmem>>, vector<4x256xf32>
      tpu.vector_store %arg8[%c0_11, %c0_12], %24 {strides = array<i32>} : memref<4x256xf32, #tpu.memory_space<vmem>>, vector<4x256xf32>,
    } else {
    }
    %c3_i32 = arith.constant 3 : i32
    %20 = arith.cmpi eq, %arg1, %c3_i32 : i32
    %21 = arith.extui %20 : i1 to i32
    %c0_i32_8 = arith.constant 0 : i32
    %22 = arith.cmpi ne, %21, %c0_i32_8 : i32
    scf.if %22 {
      %c0_9 = arith.constant 0 : index
      %c0_10 = arith.constant 0 : index
      %23 = vector.load %arg8[%c0_9, %c0_10] : memref<4x256xf32, #tpu.memory_space<vmem>>, vector<4x256xf32>
      %cst_11 = arith.constant 2.500000e-01 : f32
      %24 = vector.broadcast %cst_11 : f32 to vector<4x256xf32>
      %25 = arith.mulf %23, %24 : vector<4x256xf32>
      %c0_12 = arith.constant 0 : index
      %c0_13 = arith.constant 0 : index
      %26 = vector.load %arg8[%c0_12, %c0_13] : memref<4x256xf32, #tpu.memory_space<vmem>>, vector<4x256xf32>
      tpu.vector_store %arg8[%c0_12, %c0_13], %25 {strides = array<i32>} : memref<4x256xf32, #tpu.memory_space<vmem>>, vector<4x256xf32>,
    } else {
    }
    return
  }
  func.func @transform_0(%arg0: i32, %arg1: i32) -> (i32, i32) {
    %c0_i32 = arith.constant 0 : i32
    %c0_i32_0 = arith.constant 0 : i32
    %c0_i32_1 = arith.constant 0 : i32
    return %c0_i32, %c0_i32_0 : i32, i32
  }
  func.func @transform_1(%arg0: i32, %arg1: i32) -> (i32, i32) {
    %c0_i32 = arith.constant 0 : i32
    %c0_i32_0 = arith.constant 0 : i32
    %c0_i32_1 = arith.constant 0 : i32
    return %c0_i32, %c0_i32_0 : i32, i32
  }
  func.func @transform_2(%arg0: i32, %arg1: i32) -> (i32, i32, i32) {
    %c0_i32 = arith.constant 0 : i32
    %c0_i32_0 = arith.constant 0 : i32
    %c0_i32_1 = arith.constant 0 : i32
    %c0_i32_2 = arith.constant 0 : i32
    return %c0_i32, %c0_i32_0, %c0_i32_1 : i32, i32, i32
  }
  func.func @transform_3(%arg0: i32, %arg1: i32) -> (i32, i32) {
    %c0_i32 = arith.constant 0 : i32
    %c0_i32_0 = arith.constant 0 : i32
    %c0_i32_1 = arith.constant 0 : i32
    return %c0_i32, %c0_i32_0 : i32, i32
  }
  func.func @transform_4(%arg0: i32, %arg1: i32) -> (i32, i32, i32) {
    %c0_i32 = arith.constant 0 : i32
    %c0_i32_0 = arith.constant 0 : i32
    %c0_i32_1 = arith.constant 0 : i32
    return %arg1, %c0_i32, %c0_i32_0 : i32, i32, i32
  }
  func.func @transform_5(%arg0: i32, %arg1: i32) -> (i32, i32) {
    %c0_i32 = arith.constant 0 : i32
    %c0_i32_0 = arith.constant 0 : i32
    return %c0_i32, %arg0 : i32, i32
  }
  func.func @transform_6(%arg0: i32, %arg1: i32) -> (i32, i32) {
    %c0_i32 = arith.constant 0 : i32
    %c0_i32_0 = arith.constant 0 : i32
    return %c0_i32, %arg0 : i32, i32
  }
}

</mosaic_0001>

<bundles_post_ra>
// kernel: tpu_custom_call.1
= control target key start
LH: loop header
LB: loop body
LE: loop exit
PB: predicated region body
PF: predicated region fallthrough
CT: control target
= control target key end

     0   :  { %s1721_s0 = inlined_call_operand.hbm [shape: f32[4,64], index: 0, kind: input, shape index: {}]   ;;  %s1722_s1 = inlined_call_operand.vmem [shape: f32[4,1], index: 1, kind: input, shape index: {}]   ;;  %s1723_s2 = inlined_call_operand.hbm [shape: f32[3,4,4], index: 2, kind: input, shape index: {}]   ;;  %s1724_s3 = inlined_call_operand.hbm [shape: f32[4,8], index: 3, kind: input, shape index: {}]   ;;  %s1725_s4 = inlined_call_operand.vmem [shape: bf16[4,4,64], index: 4, kind: input, shape index: {}]   ;;  %s1726_s5 = inlined_call_operand.hbm [shape: f32[64,512], index: 5, kind: input, shape index: {}]   ;;  %s1727_s6 = inlined_call_operand.hbm [shape: f32[4,512], index: 6, kind: output, shape index: {}]  }
   0x1   :  { %1732 = sst [smem:[#allocation21_spill]] %s1721_s0 }
   0x2   :  { %1733 = sst [smem:[#allocation22_spill]] %s1723_s2 }
   0x3   :  { %1734 = sst [smem:[#allocation23_spill]] %s1724_s3 }
   0x4   :  { %11 = vsyncpa [#allocation4], 0 }
   0x5   :  { %12 = vsyncpa [#allocation7], 0 }
   0x6   :  { %13 = vsyncpa [#allocation10], 0 }
   0x7   :  { %15 = vsyncpa [#allocation10 + $0x1], 0 }
   0x8   :  { %16 = vsyncpa [#allocation5], 0 }
   0x9   :  { %18 = vsyncpa [#allocation5 + $0x1], 0  ;;  %s1466_s21 = smov 0   ;;  %s1468_s22 = smov 0  }
   0xa   :  { %s1470_s23 = smov 0   ;;  %s1472_s24 = smov 0  }
   0xb   :  { %s1474_s25 = smov 0   ;;  %s1476_s26 = smov 0  }
   0xc   :  { %s1478_s27 = smov 0   ;;  %s1480_s28 = smov 0  }
   0xd LB: > { %1735 = sst [smem:[#allocation16_spill]] %s1384_s21  ;;  %s951_s29 = sadd.s32 4294967295, %s1412_s28   ;;  %s1412_s28 = sphi %s1480_s28, %s24_s28   ;;  %s1408_s27 = sphi %s1478_s27, %s1760_s27   ;;  %s1404_s26 = sphi %s1476_s26, %s1754_s26   ;;  %s1400_s25 = sphi %s1474_s25, %s1759_s25   ;;  %s1396_s24 = sphi %s1472_s24, %s1753_s24   ;;  %s1392_s23 = sphi %s1470_s23, %s1758_s23   ;;  %s1388_s22 = sphi %s1468_s22, %s1757_s22   ;;  %s1384_s21 = sphi %s1466_s21, %s1756_s21  }
   0xe   : > { %1736 = sst [smem:[#allocation17_spill]] %s1404_s26  ;;  %s952_s30 = sadd.s32 4294967294, %s1412_s28  }
   0xf   : > { %p166_p0 = scmp.ne.s32.totalorder %s1388_s22, %s1384_s21  ;;  %p1510_p1 = scmp.eq.s32.totalorder %s951_s29, 0 }
  0x10   : > { %p1514_p2 = scmp.eq.s32.totalorder %s951_s29, 7  ;;  %p196_p3 = scmp.eq.s32.totalorder %s952_s30, 7 }
  0x11   : > { %p1520_p4 = por %p1510_p1, %p166_p0  ;;  %p953_p5 = scmp.ge.s32.totalorder %s1412_s28, 1 }
  0x12   : > { %p1525_p6 = por %p196_p3, %p166_p0  ;;  %p203_p7 = scmp.lt.s32.totalorder %s1412_s28, 9 }
  0x13   : > { %s1742_s2 = sld [smem:[#allocation22_spill]]  ;;  %s1414_s15 = smov [#allocation6]  }
  0x14   : > { %s1740_s10 = scalar_select %p1525_p6, 1, 0 }
  0x15   : > { %p1533_p8 = pnand %p953_p5, %p203_p7  ;;  %s231_s16 = sshll.u32 %s1414_s15, 4  ;;  %s232_s16 = int_to_ptr.vmem [resolvable:$true] %s231_s16 }
  0x16   : > { %1741 = sst [smem:[#allocation18_spill]] %s1740_s10  ;;  %s1415_s18 = smov 64  }
  0x17   : > { %p1064_p9 = pneg %p1533_p8  ;;  %s1416_s19 = smov 4  }
  0x18   : > { %s1745_s0 = sld [smem:[#allocation21_spill]]  ;;  %s1417_s11 = smov [#allocation3]  }
  0x19   : > { %s229_s13 = sshll.u32 %s1742_s2, 4  ;;  %p1541_p10 = pnand %p1064_p9, %p1510_p1  ;;  %s230_s13 = int_to_ptr.hbm [resolvable:$true] %s229_s13 }
  0x1a   : > { %s217_s12 = sshll.u32 %s1417_s11, 4  ;;  %s1746_s3 = sld [smem:[#allocation23_spill]]  ;;  %s218_s12 = int_to_ptr.vmem [resolvable:$true] %s217_s12 }
  0x1b   : > { %1070 = dma.hbm_to_vmem [thread:$0]  (!%p1541_p10), %s230_s13, 192, %s232_s16, [#allocation7], %s1415_s18, %s1415_s18, %s1416_s19  }
  0x1c   : > { %s1418_s13 = smov [#allocation8]   ;;  %s33_s18 = sadd.s32 1, %s1404_s26 }
  0x1d   : > { %s246_s16 = sshll.u32 %s1418_s13, 4  ;;  %p34_p11 = scmp.ge.s32.totalorder %s33_s18, 4  ;;  %s247_s16 = int_to_ptr.vmem [resolvable:$true] %s246_s16 }
  0x1e   : > { %s215_s30 = sshll.u32 %s1745_s0, 4  ;;  %s36_s19 = sadd.s32 1, %s1408_s27  ;;  %s216_s30 = int_to_ptr.hbm [resolvable:$true] %s215_s30 }
  0x1f   : > { %1067 = dma.hbm_to_vmem [thread:$0]  (!%p1541_p10), %s216_s30, 64, %s218_s12, [#allocation4]  }
  0x20   : > { %s244_s10 = sshll.u32 %s1746_s3, 4  ;;  %s153_s2 = sadd.s32 1, %s1392_s23  ;;  %s245_s10 = int_to_ptr.hbm [resolvable:$true] %s244_s10 }
  0x21   : > { %1073 = dma.hbm_to_vmem [thread:$0]  (!%p1541_p10), %s245_s10, 64, %s247_s16, [#allocation7]  }
  0x22   : > { %p160_p12 = scmp.ne.s32.totalorder %s1392_s23, %s1388_s22  ;;  %s1762_s18 = smov (%p34_p11, %s33_s18), 0 }
  0x23   : > { %1747 = sst [smem:[#allocation19_spill]] %s1762_s18  ;;  %s1764_s19 = smov (!%p34_p11, %s36_s19), %s1408_s27 }
  0x24   : > { %p161_p13 = scmp.eq.s32.totalorder %s1412_s28, 0  ;;  %p1568_p0 = por %p1514_p2, %p160_p12 }
  0x25   : > { %p38_p3 = scmp.ge.s32.totalorder %s1764_s19, 2  ;;  %p1085_p5 = scmp.lt.s32.totalorder %s1412_s28, 8 }
  0x26   : > { %p1573_p7 = por %p161_p13, %p160_p12  ;;  %s264_s17 = sand.u32 1, %s1392_s23  }
  0x27   : > { %s1766_s19 = smov (%p38_p3, %s1764_s19), 0  ;;  %s958_s29 = sshll.u32 %s264_s17, 7 }
  0x28   : > { %1750 = sst [smem:[#allocation20_spill]] %s1766_s19  ;;  %s150_s30 = ssub.s32 %s1408_s27, %s1766_s19 }
  0x29   : > { %p151_p9 = scmp.eq.s32.totalorder %s150_s30, 0  ;;  %s1025_s8 = sshll.u32 %s1408_s27, 4 }
  0x2a   : > { %s273_s15 = scalar_lea.hbm %s1726_s5, %s1025_s8  ;;  %s268_s13 = scalar_lea.vmem [#allocation9], %s958_s29 }
  0x2b   : > { %s276_s16 = sshll.u32 %s268_s13, 4  ;;  %s274_s3 = sshll.u32 %s273_s15, 4  ;;  %s277_s16 = int_to_ptr.vmem [resolvable:$true] %s276_s16  ;;  %s275_s3 = int_to_ptr.hbm [resolvable:$true] %s274_s3 }
  0x2c   : > { %s1587_s0 = scalar_select %p151_p9, %s1392_s23, %s153_s2  }
  0x2d   : > { %p1075_p2 = pnand %p1085_p5, %p1573_p7  ;;  %s265_s18 = scalar_lea.sflag [#allocation10], %s264_s17 }
  0x2e   : > { %s1419_s26 = smov 512   ;;  %s1420_s21 = smov 256  }
  0x2f   : > { %s1421_s19 = smov 16   ;;  %288 = sbr.rel (%p1533_p8) target bundleno = 719 (0x2cf), region = 44 }
  0x30   : > { %1077 = dma.hbm_to_vmem [thread:$0]  (!%p1075_p2), %s275_s3, 2048, %s277_s16, %s265_s18, %s1419_s26, %s1420_s21, %s1421_s19  }
  0x34   : > { %1367 = dma.done.wait (%p1510_p1), [#allocation4], 64  }
  0x35   : > { %1369 = vsyncadd (%p1510_p1), [#allocation4], 4294967232 }
  0x36   : > { %1371 = dma.done.wait (%p1510_p1), [#allocation7], 256  }
  0x37   : > { %1373 = vsyncadd (%p1510_p1), [#allocation7], 4294967040  ;;  %s1604_s2 = sand.u32 1, %s1388_s22  }
  0x38   : > { %s965_s3 = sshll.u32 %s1604_s2, 7  ;;  %s306_s21 = scalar_lea.sflag [#allocation10], %s1604_s2 }
  0x39   : > { %s1608_s26 = scalar_lea.vmem [#allocation9], %s965_s3 }
  0x3a   : > { %1375 = dma.done.wait (%p1520_p4), %s306_s21, 2048  }
  0x3b   : > { %1377 = vsyncadd (%p1520_p4), %s306_s21, 4294965248  ;;  %s966_s7 = sshll.u32 %s1604_s2, 3  ;;  %p343_p1 = scmp.lt.s32.totalorder %s1396_s24, 3 }
  0x3c   : > { %s1622_s29 = scalar_lea.vmem [#allocation11], %s966_s7  ;;  %p968_p8 = scmp.ne.s32.totalorder %s1396_s24, 0 }
  0x3d   : > { %s344_s14 = scalar_select %p343_p1, %s1396_s24, 3 }
  0x3e   : > { %353 = sbr.rel (%p968_p8) target bundleno = 515 (0x203), region = 64 }
  0x3f   : > { %s967_s18 = sshll.u32 %s344_s14, 1 }
  0x40   : > { %s1620_s17 = scalar_lea.vmem %s1725_s4, %s967_s18 }
  0x43   : > { %v355_v0 = vld [vmem:[%s1722_s1] sm:$0xf]  ;;  %v1422_v1 = vmov 0   ;;  %v441_v2 = vld [vmem:[#allocation8] sm:$0xf]  ;;  %v1423_v3 = vmov 3  }
  0x44   : > { %1171 = vset.pattern.permute.xlu0 %v1422_v1  ;;  %1173 = vset.pattern.permute.xlu1 %v1423_v3  ;;  %1182 = vrcp.f32 %v441_v2  ;;  %v1424_v4 = vmov 2   ;;  %v1425_v5 = vmov 1   ;;  %v516_v8 = vadd.f32 8.0, %v441_v2  ;;  %v354_v19 = vld [vmem:[#allocation3] sm:$0xf]  ;;  %v566_v30 = vld [vmem:[%s1608_s26 + $0x70] sm:$0xff] }
  0x45   : > { %358 = vperm.xlu0 %1171, %v355_v0   ;;  %466 = vperm.xlu1 %1173, %v441_v2   ;;  %v481_v9 = vand.u32 2147483648, %v441_v2  ;;  %vm475_vm0 = vweird.f32 %v441_v2  ;;  %v479_v11 = vand.u32 2147483647, %v441_v2  ;;  %v1426_v15 = vmov 7   ;;  %v362_v24 = vld [vmem:[#allocation6] sm:$0xf] }
  0x46   : > { %1175 = vset.pattern.permute.xlu2 %v1425_v5  ;;  %v976_v13 = vadd.f32 -2.0, %v516_v8  ;;  %v1427_v20 = vmov 4   ;;  %v1428_v21 = vmov 5   ;;  %vm367_vm4 = vcmask 1043456   ;;  %v417_v25 = vld [vmem:[#allocation6 + $0x8] sm:$0xf]  ;;  %580 = vmatpush.msra.mxu3 %v566_v30 }
  0x47   : > { %v482_v14 = vor.u32 1.1754944e-38, %v481_v9  ;;  %vm480_vm3 = vcmp.eq.f32.partialorder %v479_v11, 8.507059e+37  ;;  %vm363_vm5 = vcmask 31744   ;;  %v392_v26 = vld [vmem:[#allocation6 + $0x4] sm:$0xf]  ;;  %v975_v27 = vadd.f32 -7.0, %v441_v2 }
  0x48   : > { %v1429_v28 = vmov 6   ;;  %v567_v31 = vld [vmem:[%s1608_s26 + $0x78] sm:$0xff]  ;;  %v564_v33 = vld [vmem:[%s1608_s26 + $0x60] sm:$0xff]  ;;  %v565_v34 = vld [vmem:[%s1608_s26 + $0x68] sm:$0xff]  ;;  %vm568_vm10 = vcmask 523264  }
  0x49   : > { %581 = vmatpush.msra.mxu3 %v564_v33  ;;  %v562_v36 = vld [vmem:[%s1608_s26 + $0x50] sm:$0xff]  ;;  %v563_v37 = vld [vmem:[%s1608_s26 + $0x58] sm:$0xff]  ;;  %v560_v38 = vld [vmem:[%s1608_s26 + $0x40] sm:$0xff] }
  0x4a   : > { %v1183_v6 = vpop.eup %1182  ;;  %v561_v39 = vld [vmem:[%s1608_s26 + $0x48] sm:$0xff]  ;;  %v558_v42 = vld [vmem:[%s1608_s26 + $0x30] sm:$0xff]  ;;  %v559_v43 = vld [vmem:[%s1608_s26 + $0x38] sm:$0xff] }
  0x4b   : > { %v471_v7 = vmul.f32 %v1183_v6, %v441_v2  ;;  %vm476_vm1 = vweird.f32 %v1183_v6  ;;  %582 = vmatpush.msra.mxu3 %v562_v36  ;;  %v556_v45 = vld [vmem:[%s1608_s26 + $0x20] sm:$0xff]  ;;  %v557_v46 = vld [vmem:[%s1608_s26 + $0x28] sm:$0xff]  ;;  %v554_v51 = vld [vmem:[%s1608_s26 + $0x10] sm:$0xff] }
  0x4c   : > { %vm477_vm2 = vmor %vm475_vm0, %vm476_vm1  ;;  %v555_v52 = vld [vmem:[%s1608_s26 + $0x18] sm:$0xff]  ;;  %v552_v55 = vld [vmem:[%s1608_s26] sm:$0xff] }
  0x4d   : > { %1172 = vset.pattern.permute.xlu0 %v1424_v4  ;;  %1174 = vset.pattern.permute.xlu1 %v1422_v1  ;;  %v472_v10 = vsub.f32 1.0, %v471_v7  ;;  %v553_v56 = vld [vmem:[%s1608_s26 + $0x8] sm:$0xff] }
  0x4e   : > { %460 = vperm.xlu0 %1172, %v441_v2   ;;  %583 = vmatpush.msra.mxu3 %v560_v38 }
  0x4f   : > { %v473_v12 = vmul.f32 %v1183_v6, %v472_v10 }
  0x50   : > { %584 = vmatpush.msra.mxu3 %v558_v42 }
  0x51   : > { %v474_v16 = vadd.f32 %v1183_v6, %v473_v12 }
  0x52   : > { %585 = vmatpush.msra.mxu3 %v556_v45 }
  0x53   : > { %v478_v17 = vsel %vm477_vm2, %v1183_v6, %v474_v16 }
  0x54   : > { %v483_v18 = vsel %vm480_vm3, %v482_v14, %v478_v17  ;;  %586 = vmatpush.msra.mxu3 %v554_v51 }
  0x55   : > { %487 = vperm.xlu1 %1174, %v483_v18   ;;  %493 = vperm.xlu2 %1175, %v483_v18  }
  0x56   : > { %1179 = vset.pattern.permute.xlu0 %v1426_v15  ;;  %587 = vmatpush.msra.mxu3 %v552_v55 }
  0x57   : > { %542 = vperm.xlu0 %1179, %v976_v13  }
  0x5d   : > { %1177 = vset.pattern.permute.xlu1 %v1427_v20  ;;  %1176 = vset.pattern.permute.xlu2 %v1428_v21 }
  0x5e   : > { %505 = vperm.xlu1 %1177, %v441_v2   ;;  %500 = vperm.xlu2 %1176, %v441_v2  }
  0x66   : > { %1180 = vset.pattern.permute.xlu1 %v1429_v28  ;;  %1178 = vset.pattern.permute.xlu2 %v1426_v15 }
  0x67   : > { %520 = vperm.xlu1 %1180, %v975_v27   ;;  %537 = vperm.xlu2 %1178, %v975_v27  }
  0x6f   : > { %526 = vperm.xlu1 %1180, %v976_v13   ;;  %547 = vperm.xlu2 %1178, %v441_v2  }
  0x77   : > { %1181 = vset.pattern.permute.xlu2 %v1429_v28 }
  0x78   : > { %531 = vperm.xlu2 %1181, %v441_v2  }
  0xaf   : > { %v1642_v35 = vpop.permute.xlu2 %493 }
  0xb7   : > { %v359_v22 = vpop.permute.xlu0 %358  ;;  %v1638_v32 = vpop.permute.xlu1 %466 }
  0xb8   : > { %v361_v23 = vadd.f32 %v359_v22, %v354_v19  ;;  %v501_v53 = vpop.permute.xlu2 %500 }
  0xba   : > { %969 = vmatpush.msk.msra.mxu0 %vm367_vm4, %v361_v23  ;;  %971 = vmatpush.msk.msra.mxu1 %vm367_vm4, %v361_v23 }
  0xbb   : > { %973 = vmatpush.msk.msra.mxu2 %vm367_vm4, %v361_v23  ;;  %970 = vmatmul.msk.f32.vlgmr.msra.gmra.mxu0 %vm363_vm5, %v362_v24 }
  0xbc   : > { %974 = vmatmul.msk.f32.vlgmr.msra.gmra.mxu2 %vm363_vm5, %v417_v25  ;;  %972 = vmatmul.msk.f32.vlgmr.msra.gmra.mxu1 %vm363_vm5, %v392_v26 }
  0xbd   : > { %600 = vmatpush.msrb.mxu0 %v567_v31  ;;  %623 = vmatpush.msrb.mxu1 %v566_v30 }
  0xbe   : > { %643 = vmatpush.msrb.mxu2 %v567_v31 }
  0xbf   : > { %601 = vmatpush.msrb.mxu0 %v565_v34  ;;  %624 = vmatpush.msrb.mxu1 %v564_v33 }
  0xc0   : > { %644 = vmatpush.msrb.mxu2 %v565_v34  ;;  %v461_v62 = vpop.permute.xlu0 %460 }
  0xc1   : > { %602 = vmatpush.msrb.mxu0 %v563_v37  ;;  %625 = vmatpush.msrb.mxu1 %v562_v36  ;;  %v538_v6 = vpop.permute.xlu2 %537 }
  0xc2   : > { %645 = vmatpush.msrb.mxu2 %v563_v37 }
  0xc3   : > { %603 = vmatpush.msrb.mxu0 %v561_v39  ;;  %626 = vmatpush.msrb.mxu1 %v560_v38 }
  0xc4   : > { %646 = vmatpush.msrb.mxu2 %v561_v39 }
  0xc5   : > { %604 = vmatpush.msrb.mxu0 %v559_v43  ;;  %627 = vmatpush.msrb.mxu1 %v558_v42 }
  0xc6   : > { %647 = vmatpush.msrb.mxu2 %v559_v43 }
  0xc7   : > { %v488_v47 = vpop.permute.xlu1 %487  ;;  %605 = vmatpush.msrb.mxu0 %v557_v46  ;;  %628 = vmatpush.msrb.mxu1 %v556_v45 }
  0xc8   : > { %648 = vmatpush.msrb.mxu2 %v557_v46 }
  0xc9   : > { %606 = vmatpush.msrb.mxu0 %v555_v52  ;;  %629 = vmatpush.msrb.mxu1 %v554_v51  ;;  %v548_v14 = vpop.permute.xlu2 %547  ;;  %v543_v20 = vpop.permute.xlu0 %542 }
  0xca   : > { %649 = vmatpush.msrb.mxu2 %v555_v52 }
  0xcb   : > { %607 = vmatpush.msrb.mxu0 %v553_v56  ;;  %630 = vmatpush.msrb.mxu1 %v552_v55 }
  0xcc   : > { %650 = vmatpush.msrb.mxu2 %v553_v56 }
  0xd0   : > { %v506_v3 = vpop.permute.xlu1 %505 }
  0xd2   : > { %v532_v24 = vpop.permute.xlu2 %531 }
  0xd9   : > { %v521_v12 = vpop.permute.xlu1 %520 }
  0xe1   : > { %v527_v23 = vpop.permute.xlu1 %526 }
 0x138   : > { %v388_v57 = vpop.f32.mrf.mxu0 }
 0x139   : > { %v413_v59 = vpop.f32.mrf.mxu1 }
 0x13f   : > { %v1633_v29 = vpop.f32.mrf.mxu2 }
 0x140   : > { %1184 = vrcp.f32 %v1633_v29  ;;  %v453_v48 = vand.u32 2147483648, %v1633_v29  ;;  %v451_v50 = vand.u32 2147483647, %v1633_v29  ;;  %vm447_vm7 = vweird.f32 %v1633_v29 }
 0x142   : > { %v454_v58 = vor.u32 1.1754944e-38, %v453_v48  ;;  %vm452_vm9 = vcmp.eq.f32.partialorder %v451_v50, 8.507059e+37 }
 0x146   : > { %v1185_v40 = vpop.eup %1184 }
 0x147   : > { %v443_v41 = vmul.f32 %v1185_v40, %v1633_v29  ;;  %vm448_vm6 = vweird.f32 %v1185_v40 }
 0x148   : > { %vm449_vm8 = vmor %vm447_vm7, %vm448_vm6 }
 0x149   : > { %v444_v44 = vsub.f32 1.0, %v443_v41 }
 0x14b   : > { %v445_v49 = vmul.f32 %v1185_v40, %v444_v44 }
 0x14d   : > { %v446_v54 = vadd.f32 %v1185_v40, %v445_v49 }
 0x14f   : > { %v450_v60 = vsel %vm449_vm8, %v1185_v40, %v446_v54 }
 0x150   : > { %v455_v61 = vsel %vm452_vm9, %v454_v58, %v450_v60 }
 0x151   : > { %v457_v63 = vmul.f32 %v455_v61, %v388_v57  ;;  %v464_v0 = vmul.f32 %v455_v61, %v413_v59 }
 0x153   : > { %v469_v1 = vsub.f32 %v464_v0, %v1638_v32  ;;  %v463_v2 = vsub.f32 %v457_v63, %v461_v62 }
 0x155   : > { %v496_v4 = vmul.f32 %v1642_v35, %v469_v1  ;;  %v490_v5 = vmul.f32 %v488_v47, %v463_v2 }
 0x157   : > { %v497_v7 = vmul.f32 %v496_v4, %v496_v4  ;;  %v491_v8 = vmul.f32 %v490_v5, %v490_v5 }
 0x159   : > { %v498_v9 = vadd.f32 %v497_v7, %v491_v8 }
 0x15b   : > { %v503_v10 = vmul.f32 %v501_v53, %v498_v9 }
 0x15d   : > { %v508_v11 = vadd.f32 %v506_v3, %v503_v10 }
 0x15f   : > { %v509_v13 = vmul.f32 %v508_v11, %v498_v9 }
 0x161   : > { %v510_v15 = vadd.f32 1.0, %v509_v13 }
 0x163   : > { %v513_v16 = vmul.f32 %v510_v15, %v469_v1  ;;  %v511_v17 = vmul.f32 %v510_v15, %v463_v2 }
 0x165   : > { %v514_v18 = vadd.f32 %v513_v16, %v1638_v32  ;;  %v512_v19 = vadd.f32 %v511_v17, %v461_v62 }
 0x167   : > { %v540_v21 = vmax.f32 %v538_v6, %v514_v18  ;;  %v523_v22 = vmax.f32 %v521_v12, %v512_v19 }
 0x169   : > { %v529_v25 = vmin.f32 %v527_v23, %v523_v22  ;;  %v545_v26 = vmin.f32 %v543_v20, %v540_v21 }
 0x16b   : > { %v550_v27 = vsub.f32 %v545_v26, %v548_v14  ;;  %v534_v28 = vsub.f32 %v529_v25, %v532_v24 }
 0x16d   : > { %v551_v29 = vadd.f32 7.0, %v550_v27  ;;  %v535_v30 = vadd.f32 7.0, %v534_v28 }
 0x16f   : > { %977 = vmatmul.msk.f32.vlgmr.msra.gmra.mxu3 %vm568_vm10, %v535_v30  ;;  %978 = vmatmul.msk.f32.vlgmr.msrb.gmra.mxu0 %vm568_vm10, %v535_v30 }
 0x170   : > { %979 = vmatmul.msk.f32.vlgmr.msrb.gmra.mxu1 %vm568_vm10, %v551_v29  ;;  %980 = vmatmul.msk.f32.vlgmr.msrb.gmra.mxu2 %vm568_vm10, %v551_v29 }
 0x1ec   : > { %v609_v31 = vpop.f32.mrf.mxu0 }
 0x1ed   : > { %v632_v33 = vpop.f32.mrf.mxu1  ;;  %v656_v34 = vmul.f32 0.5, %v609_v31 }
 0x1ee   : > { %v659_v32 = vmul.f32 0.5, %v632_v33 }
 0x1ef   : > { %v1034_v40 = vceil.f32 %v656_v34  ;;  %v1035_v41 = vfloor.f32 %v656_v34  ;;  %vm1033_vm12 = vcmp.lt.s32.totalorder %v656_v34, 0 }
 0x1f0   : > { %v1039_v35 = vceil.f32 %v659_v32  ;;  %v1040_v36 = vfloor.f32 %v659_v32  ;;  %vm1038_vm11 = vcmp.lt.s32.totalorder %v659_v32, 0 }
 0x1f1   : > { %v1036_v48 = vsel %vm1033_vm12, %v1034_v40, %v1035_v41 }
 0x1f2   : > { %v589_v37 = vpop.f32.mrf.mxu3  ;;  %v1041_v45 = vsel %vm1038_vm11, %v1039_v35, %v1040_v36  ;;  %v1037_v53 = vcvt.f32.s32 %v1036_v48 }
 0x1f3   : > { %v655_v38 = vmul.f32 0.5, %v589_v37  ;;  %v652_v39 = vpop.f32.mrf.mxu2  ;;  %v1042_v51 = vcvt.f32.s32 %v1041_v45 }
 0x1f4   : > { %v660_v42 = vmul.f32 0.5, %v652_v39 }
 0x1f5   : > { %vm1028_vm13 = vcmp.lt.s32.totalorder %v655_v38, 0  ;;  %v1029_v43 = vceil.f32 %v655_v38  ;;  %v1030_v44 = vfloor.f32 %v655_v38  ;;  %v663_v56 = vmul.u32 8, %v1042_v51 }
 0x1f6   : > { %vm1043_vm14 = vcmp.lt.s32.totalorder %v660_v42, 0  ;;  %v1044_v46 = vceil.f32 %v660_v42  ;;  %v1045_v47 = vfloor.f32 %v660_v42 }
 0x1f7   : > { %v1031_v49 = vsel %vm1028_vm13, %v1029_v43, %v1030_v44 }
 0x1f8   : > { %v1046_v50 = vsel %vm1043_vm14, %v1044_v46, %v1045_v47  ;;  %v1032_v54 = vcvt.f32.s32 %v1031_v49 }
 0x1f9   : > { %v1047_v52 = vcvt.f32.s32 %v1046_v50 }
 0x1fa   : > { %v665_v58 = vadd.s32 %v1032_v54, %v663_v56 }
 0x1fb   : > { %v664_v55 = vmul.u32 8, %v1047_v52 }
 0x1fd   : > { %v666_v57 = vadd.s32 %v1037_v53, %v664_v55 }
 0x1ff   : > { %v667_v59 = vrot.slane %v666_v57, 4 }
 0x201   : > { %v668_v60 = vsel %vm367_vm4, %v665_v58, %v667_v59 }
 0x202   : > { %669 = vst [vmem:[#allocation2] sm:$0xff] %v668_v60 }
 0x203 PF: > { %s670_s8 = sshra.s32 %s1396_s24, 2  ;;  %s673_s11 = sand.u32 3, %s1396_s24  ;;  %v679_v61 = vlaneseq  ;;  %v1430_v8 = vmov 1.0|1.0   ;;  %v746_v10 = vld [vmem:[%s1620_s17] sm:$0x3] }
 0x204   : > { %s1026_s12 = sshll.u32 %s670_s8, 3 }
 0x205   : > { %s676_s15 = sadd.s32 %s1026_s12, %s673_s11  ;;  %v680_v62 = vshrl.u32 %v679_v61, 7 }
 0x206   : > { %s677_s13 = scalar_lea.vmem [#allocation2], %s676_s15 }
 0x207   : > { %v686_v0 = vadd.s32 48, %v680_v62  ;;  %v687_v1 = vadd.s32 56, %v680_v62  ;;  %v684_v2 = vadd.s32 32, %v680_v62  ;;  %v685_v5 = vadd.s32 40, %v680_v62 }
 0x208   : > { %v682_v6 = vadd.s32 16, %v680_v62  ;;  %v683_v7 = vadd.s32 24, %v680_v62  ;;  %v681_v9 = vadd.s32 8, %v680_v62 }
 0x209   : > { %v678_v63 = vld [vmem:[%s677_s13] ss:$4 sm:$0x3] }
 0x20a   : > { %v688_v3 = vperm.slane %v678_v63, 0  ;;  %v689_v4 = vperm.slane %v678_v63, 1 }
 0x20c   : > { %vm702_vm15 = vcmp.eq.s32.totalorder %v686_v0, %v688_v3  ;;  %vm704_vm0 = vcmp.eq.s32.totalorder %v687_v1, %v688_v3  ;;  %vm703_vm1 = vcmp.eq.s32.totalorder %v686_v0, %v689_v4  ;;  %vm705_vm2 = vcmp.eq.s32.totalorder %v687_v1, %v689_v4 }
 0x20d   : > { %vm999_vm3 = vmpackc.low %vm704_vm0, %vm702_vm15  ;;  %vm698_vm4 = vcmp.eq.s32.totalorder %v684_v2, %v688_v3  ;;  %vm700_vm5 = vcmp.eq.s32.totalorder %v685_v5, %v688_v3  ;;  %vm699_vm6 = vcmp.eq.s32.totalorder %v684_v2, %v689_v4  ;;  %vm701_vm7 = vcmp.eq.s32.totalorder %v685_v5, %v689_v4 }
 0x20e   : > { %1000 = vmatpush.bf16.msk.msra.mxu0 %vm999_vm3, %v1430_v8  ;;  %vm1008_vm8 = vmpackc.low %vm705_vm2, %vm703_vm1  ;;  %vm694_vm11 = vcmp.eq.s32.totalorder %v682_v6, %v688_v3  ;;  %vm696_vm12 = vcmp.eq.s32.totalorder %v683_v7, %v688_v3  ;;  %vm695_vm13 = vcmp.eq.s32.totalorder %v682_v6, %v689_v4  ;;  %vm697_vm14 = vcmp.eq.s32.totalorder %v683_v7, %v689_v4 }
 0x20f   : > { %1009 = vmatpush.bf16.msk.msra.mxu1 %vm1008_vm8, %v1430_v8  ;;  %vm1001_vm9 = vmpackc.low %vm700_vm5, %vm698_vm4  ;;  %vm690_vm3 = vcmp.eq.s32.totalorder %v680_v62, %v688_v3  ;;  %vm692_vm1 = vcmp.eq.s32.totalorder %v681_v9, %v688_v3  ;;  %vm691_vm2 = vcmp.eq.s32.totalorder %v680_v62, %v689_v4  ;;  %vm693_vm8 = vcmp.eq.s32.totalorder %v681_v9, %v689_v4 }
 0x210   : > { %vm1010_vm10 = vmpackc.low %vm701_vm7, %vm699_vm6  ;;  %vm747_vm6 = vcmask 523264  }
 0x211   : > { %vm1003_vm0 = vmpackc.low %vm696_vm12, %vm694_vm11 }
 0x212   : > { %1002 = vmatpush.bf16.msk.msra.mxu0 %vm1001_vm9, %v1430_v8  ;;  %vm1012_vm15 = vmpackc.low %vm697_vm14, %vm695_vm13 }
 0x213   : > { %1011 = vmatpush.bf16.msk.msra.mxu1 %vm1010_vm10, %v1430_v8  ;;  %vm1005_vm4 = vmpackc.low %vm692_vm1, %vm690_vm3 }
 0x214   : > { %vm1014_vm5 = vmpackc.low %vm693_vm8, %vm691_vm2 }
 0x216   : > { %1004 = vmatpush.bf16.msk.msra.mxu0 %vm1003_vm0, %v1430_v8 }
 0x217   : > { %1013 = vmatpush.bf16.msk.msra.mxu1 %vm1012_vm15, %v1430_v8 }
 0x21a   : > { %1006 = vmatpush.bf16.msk.msra.mxu0 %vm1005_vm4, %v1430_v8 }
 0x21b   : > { %1015 = vmatpush.bf16.msk.msra.mxu1 %vm1014_vm5, %v1430_v8 }
 0x21d   : > { %1007 = vmatmul.msk.bf16.vlgmr.msra.gmra.mxu0 %vm747_vm6, %v746_v10 }
 0x21e   : > { %1016 = vmatmul.msk.bf16.vlgmr.msra.gmra.mxu1 %vm747_vm6, %v746_v10 }
 0x29a   : > { %v760_v11 = vpop.f32.mrf.mxu0 }
 0x29b   : > { %v773_v12 = vpop.f32.mrf.mxu1 }
 0x29f   : > { %779 = sbr.rel (%p968_p8) target bundleno = 680 (0x2a8), region = 68 }
 0x2a2   : > { %v762_v13 = vpop.f32.mrf.mxu0 }
 0x2a3   : > { %v775_v14 = vpop.f32.mrf.mxu1 }
 0x2a4   : > { %v782_v15 = vrot.slane %v773_v12, 4  ;;  %vm783_vm7 = vcmask 1043456  }
 0x2a6   : > { %v784_v16 = vsel %vm783_vm7, %v760_v11, %v782_v15 }
 0x2a7   : > { %786 = vst [vmem:[%s1622_s29] sm:$0xff] %v784_v16 }
 0x2a8 PF: > { %p1018_p4 = scmp.le.s32.totalorder %s1396_s24, 0 }
 0x2aa   : > { %790 = sbr.rel (%p1018_p4) target bundleno = 693 (0x2b5), region = 72 }
 0x2af   : > { %v791_v17 = vld [vmem:[%s1622_s29] sm:$0xff]  ;;  %v794_v18 = vrot.slane %v773_v12, 4  ;;  %vm795_vm9 = vcmask 1043456  }
 0x2b1   : > { %v796_v19 = vsel %vm795_vm9, %v760_v11, %v794_v18 }
 0x2b2   : > { %v798_v20 = vadd.f32 %v796_v19, %v791_v17 }
 0x2b4   : > { %799 = vst [vmem:[%s1622_s29] sm:$0xff] %v798_v20 }
 0x2b5 PF: > { %p1019_p10 = scmp.ne.s32.totalorder %s1396_s24, 3 }
 0x2b7   : > { %803 = sbr.rel (%p1019_p10) target bundleno = 704 (0x2c0), region = 76 }
 0x2bc   : > { %v804_v21 = vld [vmem:[%s1622_s29] sm:$0xff] }
 0x2bd   : > { %v805_v22 = vmul.f32 0.25, %v804_v21 }
 0x2bf   : > { %806 = vst [vmem:[%s1622_s29] sm:$0xff] %v805_v22 }
 0x2c0 PF: > { %s1027_s16 = sshll.u32 %s1400_s25, 3  ;;  %s821_s7 = sshll.u32 %s1622_s29, 4  ;;  %s822_s7 = int_to_ptr.vmem [resolvable:$true] %s821_s7 }
 0x2c1   : > { %s819_s26 = scalar_lea.hbm %s1727_s6, %s1027_s16  ;;  %s808_s24 = scalar_lea.sflag [#allocation5], %s1604_s2 }
 0x2c2   : > { %s823_s14 = sshll.u32 %s819_s26, 4  ;;  %s1326_s25 = scalar_lea.hbm %s1727_s6, 16  ;;  %s824_s14 = int_to_ptr.hbm [resolvable:$true] %s823_s14 }
 0x2c3   : > { %s1320_s18 = sshra.s32 %s824_s14, 4  ;;  %s1321_s18 = int_to_ptr.hbm [resolvable:$true] %s1320_s18 }
 0x2c4   : > { %s1322_s19 = scalar_lea.hbm %s1321_s18, 8  ;;  %p1327_p3 = scmp.lt.s32.totalorder %s1321_s18, %s1727_s6 }
 0x2c5   : > { %p1323_p11 = scmp.ne.s32.totalorder %s1321_s18, %s1322_s19  ;;  %p1328_p5 = scmp.lt.s32.totalorder %s1326_s25, %s1322_s19 }
 0x2c7   : > { %p1324_p12 = pnand %p1323_p11, %p1568_p0  ;;  %p1329_p7 = por %p1328_p5, %p1327_p3 }
 0x2c9   : > { %p1325_p13 = pneg %p1324_p12 }
 0x2cb   : > { %p1330_p9 = pnand %p1329_p7, %p1325_p13 }
 0x2cd   : > { %1333 = shalt.err (!%p1330_p9)
}
 0x2ce   : > { %1062 = dma.vmem_to_hbm [thread:$0]  (%p1568_p0), %s822_s7, 128, %s824_s14, %s808_s24  }
 0x2cf PF: > { %s1751_s2 = sld [smem:[#allocation16_spill]]  ;;  %p1089_p2 = scmp.ge.s32.totalorder %s1412_s28, 2 }
 0x2d1   : > { %p1079_p1 = pnand %p1089_p2, %p1525_p6 }
 0x2d3   : > { %p1080_p8 = pneg %p1079_p1 }
 0x2d5   : > { %s835_s8 = sand.u32 1, %s1751_s2  }
 0x2d6   : > { %s836_s11 = scalar_lea.sflag [#allocation5], %s835_s8 }
 0x2d7   : > { %1379 = dma.done.wait (%p1080_p8), %s836_s11, 128  }
 0x2d8   : > { %1381 = vsyncadd (%p1080_p8), %s836_s11, 4294967168  ;;  %s24_s28 = sadd.s32 1, %s1412_s28   ;;  %s1753_s24 = sld [smem:[#allocation17_spill]] }
 0x2d9   : > { %p21_p4 = scmp.ge.s32.totalorder %s24_s28, 10   ;;  %s1754_s26 = sld [smem:[#allocation19_spill]] }
 0x2da   : > { %s1755_s20 = sld [smem:[#allocation20_spill]]  ;;  %s1756_s21 = smov %s1388_s22 }
 0x2db   : > { %s1757_s22 = smov %s1392_s23  ;;  %s1758_s23 = smov %s1587_s0 }
 0x2dc   : > { %s1759_s25 = smov %s1408_s27  ;;  %23 = sbr.rel (!%p21_p4) target bundleno = 13 (0xd), region = 124 }
 0x2e0   : > { %s1760_s27 = smov %s1755_s20 }
 0x2e1   :  { %842 = vsyncpa [#allocation4], 1 }
 0x2e2   :  { %844 = vsyncpa [#allocation4 + $0x1], 1 }
 0x2e3   :  { %845 = vsyncpa [#allocation7], 1 }
 0x2e4   :  { %846 = vsyncpa [#allocation10], 1 }
 0x2e5   :  { %848 = vsyncpa [#allocation10 + $0x1], 1 }
 0x2e6   :  { %849 = vsyncpa [#allocation5], 1 }
 0x2e7   :  { %851 = vsyncpa [#allocation5 + $0x1], 1 }

</bundles_post_ra>
